<compile_context>
chip_gen: v5e
topology: v5e:2x2
jax: 0.10.0
libtpu: 0.0.40
codegen_flags: <defaults>
</compile_context>

<pallas_src>
import functools
import math

import jax
import jax.numpy as jnp
from jax import lax
from jax.experimental import pallas as pl
from jax.experimental.pallas import tpu as pltpu

_CHUNK_G = 8        # inner-loop chunk = one full (8, 128) f32 vreg
_MAX_TILE_G = 512   # up to 512 lane-groups (64K boxes) per grid step


def _cdiv(a, b):
    return -(-a // b)


def _round_up(x, m):
    return _cdiv(x, m) * m


def _plan_tiling(n):
    """Pick (tile_g, num_tiles, gpad) for N boxes (128 boxes per lane-group)."""
    g = _round_up(_cdiv(n, 128), _CHUNK_G)
    num_tiles = _cdiv(g, _MAX_TILE_G)
    tile_g = _round_up(_cdiv(g, num_tiles), _CHUNK_G)   # caps padding waste
    return tile_g, num_tiles, num_tiles * tile_g


def _iou_loss_body(boxes_ref, weight_ref, out_ref, acc_ref, *,
                   loc_loss_type, eps, tile_g):
    has_weight = weight_ref is not None
    step = pl.program_id(0)
    num_chunks = tile_g // _CHUNK_G

    @pl.when(step == 0)
    def _init():
        acc_ref[...] = jnp.zeros_like(acc_ref)

    def process_chunk(k, carry):
        rows = pl.ds(pl.multiple_of(k * _CHUNK_G, _CHUNK_G), _CHUNK_G)

        pred_left     = boxes_ref[0, rows, :]
        pred_top      = boxes_ref[1, rows, :]
        pred_right    = boxes_ref[2, rows, :]
        pred_bottom   = boxes_ref[3, rows, :]
        target_left   = boxes_ref[4, rows, :]
        target_top    = boxes_ref[5, rows, :]
        target_right  = boxes_ref[6, rows, :]
        target_bottom = boxes_ref[7, rows, :]

        # Identical arithmetic to the PyTorch reference (exact divisions).
        b1_x1 = pred_left - pred_right * 0.5
        b1_x2 = pred_left + pred_right * 0.5
        b1_y1 = pred_top - pred_bottom * 0.5
        b1_y2 = pred_top + pred_bottom * 0.5
        b2_x1 = target_left - target_right * 0.5
        b2_x2 = target_left + target_right * 0.5
        b2_y1 = target_top - target_bottom * 0.5
        b2_y2 = target_top + target_bottom * 0.5

        inter = (jnp.maximum(jnp.minimum(b1_x2, b2_x2) - jnp.maximum(b1_x1, b2_x1), 0.0)
                 * jnp.maximum(jnp.minimum(b1_y2, b2_y2) - jnp.maximum(b1_y1, b2_y1), 0.0))
        w1 = b1_x2 - b1_x1
        h1 = b1_y2 - b1_y1 + eps
        w2 = b2_x2 - b2_x1
        h2 = b2_y2 - b2_y1 + eps
        union = w1 * h1 + w2 * h2 - inter + eps
        iou = inter / union

        if loc_loss_type in ("GIoU", "DIoU", "CIoU"):
            cw = jnp.maximum(b1_x2, b2_x2) - jnp.minimum(b1_x1, b2_x1)
            ch = jnp.maximum(b1_y2, b2_y2) - jnp.minimum(b1_y1, b2_y1)
            if loc_loss_type in ("DIoU", "CIoU"):
                c2 = cw * cw + ch * ch + eps
                rho2 = ((b2_x1 + b2_x2 - b1_x1 - b1_x2) ** 2
                        + (b2_y1 + b2_y2 - b1_y1 - b1_y2) ** 2) * 0.25
                if loc_loss_type == "DIoU":
                    losses = 1.0 - iou + rho2 / c2
                else:  # CIoU; torch.no_grad() only affects grads, forward value identical
                    v = (4.0 / (math.pi ** 2)) * (
                        jnp.arctan(w2 / h2) - jnp.arctan(w1 / h1)) ** 2
                    alpha = v / (v - iou + (1.0 + eps))
                    losses = 1.0 - iou + (rho2 / c2 + v * alpha)
            else:  # GIoU
                c_area = cw * ch + eps
                losses = 1.0 - iou + (c_area - union) / c_area
        else:  # plain IoU
            losses = 1.0 - iou

        # Register-carried partial sums (no per-chunk VMEM RMW, no tail mask:
        # padded boxes are corrected for in the wrapper).
        if has_weight:
            w = weight_ref[rows, :]
            s_loss, s_wloss, s_w = carry
            return (s_loss + losses, s_wloss + losses * w, s_w + w)
        (s_loss,) = carry
        return (s_loss + losses,)

    zero = jnp.zeros((_CHUNK_G, 128), jnp.float32)
    init = (zero, zero, zero) if has_weight else (zero,)
    carry = lax.fori_loop(0, num_chunks, process_chunk, init,
                          unroll=min(8, num_chunks))

    acc_ref[0] += carry[0]
    if has_weight:
        acc_ref[1] += carry[1]
        acc_ref[2] += carry[2]

    @pl.when(step == pl.num_programs(0) - 1)
    def _finalize():
        # Lane-dense output row: lane0 = sum(loss), lane1 = sum(w*loss), lane2 = sum(w).
        lane = lax.broadcasted_iota(jnp.int32, (1, 128), 1)
        out = jnp.where(lane == 0, jnp.sum(acc_ref[0]), 0.0)
        if has_weight:
            out = jnp.where(lane == 1, jnp.sum(acc_ref[1]), out)
            out = jnp.where(lane == 2, jnp.sum(acc_ref[2]), out)
        out_ref[...] = out.astype(out_ref.dtype)


def _make_kernel(*, loc_loss_type, eps, tile_g, has_weight):
    if has_weight:
        def kernel(boxes_ref, weight_ref, out_ref, acc_ref):
            _iou_loss_body(boxes_ref, weight_ref, out_ref, acc_ref,
                           loc_loss_type=loc_loss_type, eps=eps, tile_g=tile_g)
    else:
        def kernel(boxes_ref, out_ref, acc_ref):
            _iou_loss_body(boxes_ref, None, out_ref, acc_ref,
                           loc_loss_type=loc_loss_type, eps=eps, tile_g=tile_g)
    return kernel


@functools.partial(jax.jit, static_argnames=("loc_loss_type", "eps"))
def iou_loss(pred, target, weight=None, *, loc_loss_type="GIoU", eps=1e-7):
    """pred, target: (N, 4); weight: optional (N,). Returns a scalar float32."""
    assert pred.ndim == 2 and pred.shape[1] == 4 and pred.shape == target.shape
    n = pred.shape[0]
    assert n != 0                     # mirrors `assert losses.numel() != 0`
    has_weight = weight is not None

    tile_g, num_tiles, gpad = _plan_tiling(n)
    pad = gpad * 128 - n

    # Single fused pack: concat pred+target -> (N, 8) -> lane-dense (8, G, 128) f32.
    # TODO(synk): accept producer-packed (8, G, 128) inputs directly so this
    # XLA-side transpose/pad (the only remaining extra HBM round-trip) is skipped.
    boxes = jnp.concatenate([pred.astype(jnp.float32),
                             target.astype(jnp.float32)], axis=1)        # (N, 8)
    boxes = jnp.pad(jnp.transpose(boxes), ((0, 0), (0, pad))).reshape(8, gpad, 128)

    args = [boxes]
    in_specs = [pl.BlockSpec((8, tile_g, 128), lambda i: (0, i, 0))]
    if has_weight:
        wp = jnp.pad(weight.astype(jnp.float32).reshape(n), (0, pad)).reshape(gpad, 128)
        args.append(wp)
        in_specs.append(pl.BlockSpec((tile_g, 128), lambda i: (i, 0)))

    kernel = _make_kernel(loc_loss_type=loc_loss_type, eps=float(eps),
                          tile_g=tile_g, has_weight=has_weight)

    partials = pl.pallas_call(
        kernel,
        grid=(num_tiles,),
        in_specs=in_specs,
        out_specs=pl.BlockSpec((1, 128), lambda i: (0, 0)),
        out_shape=jax.ShapeDtypeStruct((1, 128), jnp.float32),
        scratch_shapes=[pltpu.VMEM((3 if has_weight else 1, _CHUNK_G, 128),
                                   jnp.float32)],
        compiler_params=pltpu.CompilerParams(
            dimension_semantics=("arbitrary",)),
    )(*args)

    sums = partials[0]                                   # (128,): lanes 0..2 used
    # Each zero-padded box contributes exactly 1.0 to sum(losses)
    # (inter=0, union=c2=c_area=eps), so correct the mean by subtracting `pad`.
    mean_loss = (sums[0] - jnp.float32(pad)) / jnp.float32(n)
    if not has_weight:
        return mean_loss
    wsum = sums[2]
    safe_wsum = jnp.where(wsum > 0, wsum, jnp.float32(1.0))   # NaN-safe denominator
    return jnp.where(wsum > 0, sums[1] / safe_wsum, mean_loss)


def _iou_loss_reference(pred, target, weight=None, loc_loss_type="GIoU", eps=1e-7):
    """Pure-JAX transcription of the PyTorch module (for sanity checking)."""
    pred = pred.astype(jnp.float32)
    target = target.astype(jnp.float32)
    pred_left, pred_top, pred_right, pred_bottom = (pred[:, i] for i in range(4))
    target_left, target_top, target_right, target_bottom = (target[:, i] for i in range(4))
    b1_x1, b1_x2 = pred_left - pred_right / 2, pred_left + pred_right / 2
    b1_y1, b1_y2 = pred_top - pred_bottom / 2, pred_top + pred_bottom / 2
    b2_x1, b2_x2 = target_left - target_right / 2, target_left + target_right / 2
    b2_y1, b2_y2 = target_top - target_bottom / 2, target_top + target_bottom / 2
    inter = (jnp.maximum(jnp.minimum(b1_x2, b2_x2) - jnp.maximum(b1_x1, b2_x1), 0.0)
             * jnp.maximum(jnp.minimum(b1_y2, b2_y2) - jnp.maximum(b1_y1, b2_y1), 0.0))
    w1, h1 = b1_x2 - b1_x1, b1_y2 - b1_y1 + eps
    w2, h2 = b2_x2 - b2_x1, b2_y2 - b2_y1 + eps
    union = w1 * h1 + w2 * h2 - inter + eps
    iou = inter / union
    if loc_loss_type in ("GIoU", "DIoU", "CIoU"):
        cw = jnp.maximum(b1_x2, b2_x2) - jnp.minimum(b1_x1, b2_x1)
        ch = jnp.maximum(b1_y2, b2_y2) - jnp.minimum(b1_y1, b2_y1)
        if loc_loss_type in ("DIoU", "CIoU"):
            c2 = cw ** 2 + ch ** 2 + eps
            rho2 = ((b2_x1 + b2_x2 - b1_x1 - b1_x2) ** 2
                    + (b2_y1 + b2_y2 - b1_y1 - b1_y2) ** 2) / 4
            if loc_loss_type == "DIoU":
                losses = 1 - iou + rho2 / c2
            else:
                v = 4 / math.pi ** 2 * (jnp.arctan(w2 / h2) - jnp.arctan(w1 / h1)) ** 2
                alpha = v / (v - iou + (1 + eps))
                losses = 1 - iou + (rho2 / c2 + v * alpha)
        else:
            c_area = cw * ch + eps
            losses = 1 - iou + (c_area - union) / c_area
    else:
        losses = 1 - iou
    if weight is not None:
        wsum = jnp.sum(weight)
        weighted = jnp.sum(losses * weight) / jnp.where(wsum > 0, wsum, 1.0)
        return jnp.where(wsum > 0, weighted, jnp.mean(losses))
    return jnp.mean(losses)


if __name__ == "__main__":
    key = jax.random.PRNGKey(0)
    k1, k2, k3 = jax.random.split(key, 3)

    N = 300  # not a multiple of 128 -> exercises the padded-tail correction
    pred = jax.random.uniform(k1, (N, 4), jnp.float32, minval=0.1, maxval=10.0)
    target = jax.random.uniform(k2, (N, 4), jnp.float32, minval=0.1, maxval=10.0)
    weight = jax.random.uniform(k3, (N,), jnp.float32, minval=0.0, maxval=1.0)

    zero_box = jnp.zeros((1, 4), jnp.float32)
    results = []
    # CIoU branch is implemented but not exercised here (relies on jnp.arctan).
    for t in ("iou", "GIoU", "DIoU"):
        # The padded-tail correction assumes a zero box yields loss == 1.0 exactly.
        zref = float(_iou_loss_reference(zero_box, zero_box, None, loc_loss_type=t))
        assert zref == 1.0, f"padded-box loss for {t} is {zref}, expected exactly 1.0"
        for w in (weight, None):
            got = iou_loss(pred, target, w, loc_loss_type=t)
            ref = _iou_loss_reference(pred, target, w, loc_loss_type=t)
            got_f, ref_f = float(got), float(ref)
            if not math.isclose(got_f, ref_f, rel_tol=1e-4, abs_tol=1e-5):
                raise AssertionError(
                    f"{t} (weighted={w is not None}): kernel={got_f} ref={ref_f}")
            results.append(got)

    jax.block_until_ready(results)
    print("KERNEL_OK")
</pallas_src>

<mosaic_0001>
module attributes {stable_mosaic.version = 11 : i64} {
  func.func @kernel(%arg0: i32, %arg1: memref<8x8x128xf32, #tpu.memory_space<vmem>>, %arg2: memref<8x128xf32, #tpu.memory_space<vmem>>, %arg3: memref<1x128xf32, #tpu.memory_space<vmem>>, %arg4: memref<3x8x128xf32, #tpu.memory_space<vmem>>) attributes {dimension_semantics = [#tpu.dimension_semantics<arbitrary>], iteration_bounds = array<i64: 1>, scalar_prefetch = 0 : i64, scratch_operands = 1 : i64, tpu.core_type = #tpu.core_type<tc>, window_params = [{transform_indices = @transform_0, window_bounds = array<i64: 8, 8, 128>}, {transform_indices = @transform_1, window_bounds = array<i64: 8, 128>}, {pipeline_mode = #tpu.pipeline_mode<synchronous>, transform_indices = @transform_2, window_bounds = array<i64: 1, 128>}]} {
    %c0_i32 = arith.constant 0 : i32
    %0 = arith.cmpi eq, %arg0, %c0_i32 : i32
    %1 = arith.extui %0 : i1 to i32
    %c0_i32_0 = arith.constant 0 : i32
    %2 = arith.cmpi ne, %1, %c0_i32_0 : i32
    scf.if %2 {
      %cst_45 = arith.constant 0.000000e+00 : f32
      %109 = vector.broadcast %cst_45 : f32 to vector<3x8x128xf32>
      %c0_46 = arith.constant 0 : index
      %c0_47 = arith.constant 0 : index
      %c0_48 = arith.constant 0 : index
      %110 = vector.load %arg4[%c0_46, %c0_47, %c0_48] : memref<3x8x128xf32, #tpu.memory_space<vmem>>, vector<3x8x128xf32>
      tpu.vector_store %arg4[%c0_46, %c0_47, %c0_48], %109 {strides = array<i32>} : memref<3x8x128xf32, #tpu.memory_space<vmem>>, vector<3x8x128xf32>,
    } else {
    }
    %cst = arith.constant 0.000000e+00 : f32
    %3 = vector.broadcast %cst : f32 to vector<8x128xf32>
    %c0_i32_1 = arith.constant 0 : i32
    %c8_i32 = arith.constant 8 : i32
    %4 = arith.muli %c0_i32_1, %c8_i32 : i32
    %5 = tpu.assume_multiple %4, 8 : i32
    %c0 = arith.constant 0 : index
    %6 = arith.index_cast %5 : i32 to index
    %c0_2 = arith.constant 0 : index
    %7 = vector.load %arg1[%c0, %6, %c0_2] : memref<8x8x128xf32, #tpu.memory_space<vmem>>, vector<1x8x128xf32>
    %8 = vector.shape_cast %7 : vector<1x8x128xf32> to vector<8x128xf32>
    %c1 = arith.constant 1 : index
    %9 = arith.index_cast %5 : i32 to index
    %c0_3 = arith.constant 0 : index
    %10 = vector.load %arg1[%c1, %9, %c0_3] : memref<8x8x128xf32, #tpu.memory_space<vmem>>, vector<1x8x128xf32>
    %11 = vector.shape_cast %10 : vector<1x8x128xf32> to vector<8x128xf32>
    %c2 = arith.constant 2 : index
    %12 = arith.index_cast %5 : i32 to index
    %c0_4 = arith.constant 0 : index
    %13 = vector.load %arg1[%c2, %12, %c0_4] : memref<8x8x128xf32, #tpu.memory_space<vmem>>, vector<1x8x128xf32>
    %14 = vector.shape_cast %13 : vector<1x8x128xf32> to vector<8x128xf32>
    %c3 = arith.constant 3 : index
    %15 = arith.index_cast %5 : i32 to index
    %c0_5 = arith.constant 0 : index
    %16 = vector.load %arg1[%c3, %15, %c0_5] : memref<8x8x128xf32, #tpu.memory_space<vmem>>, vector<1x8x128xf32>
    %17 = vector.shape_cast %16 : vector<1x8x128xf32> to vector<8x128xf32>
    %c4 = arith.constant 4 : index
    %18 = arith.index_cast %5 : i32 to index
    %c0_6 = arith.constant 0 : index
    %19 = vector.load %arg1[%c4, %18, %c0_6] : memref<8x8x128xf32, #tpu.memory_space<vmem>>, vector<1x8x128xf32>
    %20 = vector.shape_cast %19 : vector<1x8x128xf32> to vector<8x128xf32>
    %c5 = arith.constant 5 : index
    %21 = arith.index_cast %5 : i32 to index
    %c0_7 = arith.constant 0 : index
    %22 = vector.load %arg1[%c5, %21, %c0_7] : memref<8x8x128xf32, #tpu.memory_space<vmem>>, vector<1x8x128xf32>
    %23 = vector.shape_cast %22 : vector<1x8x128xf32> to vector<8x128xf32>
    %c6 = arith.constant 6 : index
    %24 = arith.index_cast %5 : i32 to index
    %c0_8 = arith.constant 0 : index
    %25 = vector.load %arg1[%c6, %24, %c0_8] : memref<8x8x128xf32, #tpu.memory_space<vmem>>, vector<1x8x128xf32>
    %26 = vector.shape_cast %25 : vector<1x8x128xf32> to vector<8x128xf32>
    %c7 = arith.constant 7 : index
    %27 = arith.index_cast %5 : i32 to index
    %c0_9 = arith.constant 0 : index
    %28 = vector.load %arg1[%c7, %27, %c0_9] : memref<8x8x128xf32, #tpu.memory_space<vmem>>, vector<1x8x128xf32>
    %29 = vector.shape_cast %28 : vector<1x8x128xf32> to vector<8x128xf32>
    %cst_10 = arith.constant 5.000000e-01 : f32
    %30 = vector.broadcast %cst_10 : f32 to vector<8x128xf32>
    %31 = arith.mulf %14, %30 : vector<8x128xf32>
    %32 = arith.subf %8, %31 : vector<8x128xf32>
    %cst_11 = arith.constant 5.000000e-01 : f32
    %33 = vector.broadcast %cst_11 : f32 to vector<8x128xf32>
    %34 = arith.mulf %14, %33 : vector<8x128xf32>
    %35 = arith.addf %8, %34 : vector<8x128xf32>
    %cst_12 = arith.constant 5.000000e-01 : f32
    %36 = vector.broadcast %cst_12 : f32 to vector<8x128xf32>
    %37 = arith.mulf %17, %36 : vector<8x128xf32>
    %38 = arith.subf %11, %37 : vector<8x128xf32>
    %cst_13 = arith.constant 5.000000e-01 : f32
    %39 = vector.broadcast %cst_13 : f32 to vector<8x128xf32>
    %40 = arith.mulf %17, %39 : vector<8x128xf32>
    %41 = arith.addf %11, %40 : vector<8x128xf32>
    %cst_14 = arith.constant 5.000000e-01 : f32
    %42 = vector.broadcast %cst_14 : f32 to vector<8x128xf32>
    %43 = arith.mulf %26, %42 : vector<8x128xf32>
    %44 = arith.subf %20, %43 : vector<8x128xf32>
    %cst_15 = arith.constant 5.000000e-01 : f32
    %45 = vector.broadcast %cst_15 : f32 to vector<8x128xf32>
    %46 = arith.mulf %26, %45 : vector<8x128xf32>
    %47 = arith.addf %20, %46 : vector<8x128xf32>
    %cst_16 = arith.constant 5.000000e-01 : f32
    %48 = vector.broadcast %cst_16 : f32 to vector<8x128xf32>
    %49 = arith.mulf %29, %48 : vector<8x128xf32>
    %50 = arith.subf %23, %49 : vector<8x128xf32>
    %cst_17 = arith.constant 5.000000e-01 : f32
    %51 = vector.broadcast %cst_17 : f32 to vector<8x128xf32>
    %52 = arith.mulf %29, %51 : vector<8x128xf32>
    %53 = arith.addf %23, %52 : vector<8x128xf32>
    %54 = arith.minimumf %35, %47 : vector<8x128xf32>
    %55 = arith.maximumf %32, %44 : vector<8x128xf32>
    %56 = arith.subf %54, %55 : vector<8x128xf32>
    %cst_18 = arith.constant 0.000000e+00 : f32
    %57 = vector.broadcast %cst_18 : f32 to vector<8x128xf32>
    %58 = arith.maximumf %56, %57 : vector<8x128xf32>
    %59 = arith.minimumf %41, %53 : vector<8x128xf32>
    %60 = arith.maximumf %38, %50 : vector<8x128xf32>
    %61 = arith.subf %59, %60 : vector<8x128xf32>
    %cst_19 = arith.constant 0.000000e+00 : f32
    %62 = vector.broadcast %cst_19 : f32 to vector<8x128xf32>
    %63 = arith.maximumf %61, %62 : vector<8x128xf32>
    %64 = arith.mulf %58, %63 : vector<8x128xf32>
    %65 = arith.subf %35, %32 : vector<8x128xf32>
    %66 = arith.subf %41, %38 : vector<8x128xf32>
    %cst_20 = arith.constant 1.000000e-07 : f32
    %67 = vector.broadcast %cst_20 : f32 to vector<8x128xf32>
    %68 = arith.addf %66, %67 : vector<8x128xf32>
    %69 = arith.subf %47, %44 : vector<8x128xf32>
    %70 = arith.subf %53, %50 : vector<8x128xf32>
    %cst_21 = arith.constant 1.000000e-07 : f32
    %71 = vector.broadcast %cst_21 : f32 to vector<8x128xf32>
    %72 = arith.addf %70, %71 : vector<8x128xf32>
    %73 = arith.mulf %65, %68 : vector<8x128xf32>
    %74 = arith.mulf %69, %72 : vector<8x128xf32>
    %75 = arith.addf %73, %74 : vector<8x128xf32>
    %76 = arith.subf %75, %64 : vector<8x128xf32>
    %cst_22 = arith.constant 1.000000e-07 : f32
    %77 = vector.broadcast %cst_22 : f32 to vector<8x128xf32>
    %78 = arith.addf %76, %77 : vector<8x128xf32>
    %79 = arith.divf %64, %78 : vector<8x128xf32>
    %cst_23 = arith.constant 1.000000e+00 : f32
    %80 = vector.broadcast %cst_23 : f32 to vector<8x128xf32>
    %81 = arith.subf %80, %79 : vector<8x128xf32>
    %82 = arith.index_cast %5 : i32 to index
    %c0_24 = arith.constant 0 : index
    %83 = vector.load %arg2[%82, %c0_24] : memref<8x128xf32, #tpu.memory_space<vmem>>, vector<8x128xf32>
    %84 = arith.addf %3, %81 : vector<8x128xf32>
    %85 = arith.mulf %81, %83 : vector<8x128xf32>
    %86 = arith.addf %3, %85 : vector<8x128xf32>
    %87 = arith.addf %3, %83 : vector<8x128xf32>
    %c1_i32 = arith.constant 1 : i32
    %c0_25 = arith.constant 0 : index
    %c0_26 = arith.constant 0 : index
    %c0_27 = arith.constant 0 : index
    %88 = vector.load %arg4[%c0_25, %c0_26, %c0_27] : memref<3x8x128xf32, #tpu.memory_space<vmem>>, vector<1x8x128xf32>
    %89 = vector.shape_cast %88 : vector<1x8x128xf32> to vector<8x128xf32>
    %90 = arith.addf %89, %84 : vector<8x128xf32>
    %c0_28 = arith.constant 0 : index
    %c0_29 = arith.constant 0 : index
    %c0_30 = arith.constant 0 : index
    %91 = vector.load %arg4[%c0_28, %c0_29, %c0_30] : memref<3x8x128xf32, #tpu.memory_space<vmem>>, vector<1x8x128xf32>
    %92 = vector.shape_cast %91 : vector<1x8x128xf32> to vector<8x128xf32>
    %93 = vector.shape_cast %90 : vector<8x128xf32> to vector<1x8x128xf32>
    tpu.vector_store %arg4[%c0_28, %c0_29, %c0_30], %93 {strides = array<i32>} : memref<3x8x128xf32, #tpu.memory_space<vmem>>, vector<1x8x128xf32>,
    %c1_31 = arith.constant 1 : index
    %c0_32 = arith.constant 0 : index
    %c0_33 = arith.constant 0 : index
    %94 = vector.load %arg4[%c1_31, %c0_32, %c0_33] : memref<3x8x128xf32, #tpu.memory_space<vmem>>, vector<1x8x128xf32>
    %95 = vector.shape_cast %94 : vector<1x8x128xf32> to vector<8x128xf32>
    %96 = arith.addf %95, %86 : vector<8x128xf32>
    %c1_34 = arith.constant 1 : index
    %c0_35 = arith.constant 0 : index
    %c0_36 = arith.constant 0 : index
    %97 = vector.load %arg4[%c1_34, %c0_35, %c0_36] : memref<3x8x128xf32, #tpu.memory_space<vmem>>, vector<1x8x128xf32>
    %98 = vector.shape_cast %97 : vector<1x8x128xf32> to vector<8x128xf32>
    %99 = vector.shape_cast %96 : vector<8x128xf32> to vector<1x8x128xf32>
    tpu.vector_store %arg4[%c1_34, %c0_35, %c0_36], %99 {strides = array<i32>} : memref<3x8x128xf32, #tpu.memory_space<vmem>>, vector<1x8x128xf32>,
    %c2_37 = arith.constant 2 : index
    %c0_38 = arith.constant 0 : index
    %c0_39 = arith.constant 0 : index
    %100 = vector.load %arg4[%c2_37, %c0_38, %c0_39] : memref<3x8x128xf32, #tpu.memory_space<vmem>>, vector<1x8x128xf32>
    %101 = vector.shape_cast %100 : vector<1x8x128xf32> to vector<8x128xf32>
    %102 = arith.addf %101, %87 : vector<8x128xf32>
    %c2_40 = arith.constant 2 : index
    %c0_41 = arith.constant 0 : index
    %c0_42 = arith.constant 0 : index
    %103 = vector.load %arg4[%c2_40, %c0_41, %c0_42] : memref<3x8x128xf32, #tpu.memory_space<vmem>>, vector<1x8x128xf32>
    %104 = vector.shape_cast %103 : vector<1x8x128xf32> to vector<8x128xf32>
    %105 = vector.shape_cast %102 : vector<8x128xf32> to vector<1x8x128xf32>
    tpu.vector_store %arg4[%c2_40, %c0_41, %c0_42], %105 {strides = array<i32>} : memref<3x8x128xf32, #tpu.memory_space<vmem>>, vector<1x8x128xf32>,
    %c0_i32_43 = arith.constant 0 : i32
    %106 = arith.cmpi eq, %arg0, %c0_i32_43 : i32
    %107 = arith.extui %106 : i1 to i32
    %c0_i32_44 = arith.constant 0 : i32
    %108 = arith.cmpi ne, %107, %c0_i32_44 : i32
    scf.if %108 {
      %109 = tpu.iota {dimensions = array<i32: 1>} : vector<1x128xi32>
      %c0_i32_45 = arith.constant 0 : i32
      %110 = vector.broadcast %c0_i32_45 : i32 to vector<1x128xi32>
      %111 = arith.cmpi eq, %109, %110 : vector<1x128xi32>
      %c0_46 = arith.constant 0 : index
      %c0_47 = arith.constant 0 : index
      %c0_48 = arith.constant 0 : index
      %112 = vector.load %arg4[%c0_46, %c0_47, %c0_48] : memref<3x8x128xf32, #tpu.memory_space<vmem>>, vector<1x8x128xf32>
      %113 = vector.shape_cast %112 : vector<1x8x128xf32> to vector<8x128xf32>
      %114 = vector.shape_cast %113 : vector<8x128xf32> to vector<1x8x128xf32>
      %cst_49 = arith.constant dense<0.000000e+00> : vector<1xf32>
      %115 = vector.multi_reduction <add>, %114, %cst_49 [1, 2] : vector<1x8x128xf32> to vector<1xf32>
      %116 = vector.shape_cast %115 : vector<1xf32> to vector<1x1x1xf32>
      %117 = vector.extract %116[0, 0, 0] : f32 from vector<1x1x1xf32>
      %cst_50 = arith.constant 0.000000e+00 : f32
      %118 = vector.broadcast %117 : f32 to vector<1x128xf32>
      %119 = vector.broadcast %cst_50 : f32 to vector<1x128xf32>
      %120 = arith.select %111, %118, %119 : vector<1x128xi1>, vector<1x128xf32>
      %c1_i32_51 = arith.constant 1 : i32
      %121 = vector.broadcast %c1_i32_51 : i32 to vector<1x128xi32>
      %122 = arith.cmpi eq, %109, %121 : vector<1x128xi32>
      %c1_52 = arith.constant 1 : index
      %c0_53 = arith.constant 0 : index
      %c0_54 = arith.constant 0 : index
      %123 = vector.load %arg4[%c1_52, %c0_53, %c0_54] : memref<3x8x128xf32, #tpu.memory_space<vmem>>, vector<1x8x128xf32>
      %124 = vector.shape_cast %123 : vector<1x8x128xf32> to vector<8x128xf32>
      %125 = vector.shape_cast %124 : vector<8x128xf32> to vector<1x8x128xf32>
      %cst_55 = arith.constant dense<0.000000e+00> : vector<1xf32>
      %126 = vector.multi_reduction <add>, %125, %cst_55 [1, 2] : vector<1x8x128xf32> to vector<1xf32>
      %127 = vector.shape_cast %126 : vector<1xf32> to vector<1x1x1xf32>
      %128 = vector.extract %127[0, 0, 0] : f32 from vector<1x1x1xf32>
      %129 = vector.broadcast %128 : f32 to vector<1x128xf32>
      %130 = arith.select %122, %129, %120 : vector<1x128xi1>, vector<1x128xf32>
      %c2_i32 = arith.constant 2 : i32
      %131 = vector.broadcast %c2_i32 : i32 to vector<1x128xi32>
      %132 = arith.cmpi eq, %109, %131 : vector<1x128xi32>
      %c2_56 = arith.constant 2 : index
      %c0_57 = arith.constant 0 : index
      %c0_58 = arith.constant 0 : index
      %133 = vector.load %arg4[%c2_56, %c0_57, %c0_58] : memref<3x8x128xf32, #tpu.memory_space<vmem>>, vector<1x8x128xf32>
      %134 = vector.shape_cast %133 : vector<1x8x128xf32> to vector<8x128xf32>
      %135 = vector.shape_cast %134 : vector<8x128xf32> to vector<1x8x128xf32>
      %cst_59 = arith.constant dense<0.000000e+00> : vector<1xf32>
      %136 = vector.multi_reduction <add>, %135, %cst_59 [1, 2] : vector<1x8x128xf32> to vector<1xf32>
      %137 = vector.shape_cast %136 : vector<1xf32> to vector<1x1x1xf32>
      %138 = vector.extract %137[0, 0, 0] : f32 from vector<1x1x1xf32>
      %139 = vector.broadcast %138 : f32 to vector<1x128xf32>
      %140 = arith.select %132, %139, %130 : vector<1x128xi1>, vector<1x128xf32>
      %c0_60 = arith.constant 0 : index
      %c0_61 = arith.constant 0 : index
      %141 = vector.load %arg3[%c0_60, %c0_61] : memref<1x128xf32, #tpu.memory_space<vmem>>, vector<1x128xf32>
      tpu.vector_store %arg3[%c0_60, %c0_61], %140 {strides = array<i32>} : memref<1x128xf32, #tpu.memory_space<vmem>>, vector<1x128xf32>,
    } else {
    }
    return
  }
  func.func @transform_0(%arg0: i32) -> (i32, i32, i32) {
    %c0_i32 = arith.constant 0 : i32
    %c0_i32_0 = arith.constant 0 : i32
    %c0_i32_1 = arith.constant 0 : i32
    return %c0_i32, %arg0, %c0_i32_0 : i32, i32, i32
  }
  func.func @transform_1(%arg0: i32) -> (i32, i32) {
    %c0_i32 = arith.constant 0 : i32
    %c0_i32_0 = arith.constant 0 : i32
    return %arg0, %c0_i32 : i32, i32
  }
  func.func @transform_2(%arg0: i32) -> (i32, i32) {
    %c0_i32 = arith.constant 0 : i32
    %c0_i32_0 = arith.constant 0 : i32
    %c0_i32_1 = arith.constant 0 : i32
    return %c0_i32, %c0_i32_0 : i32, i32
  }
}

</mosaic_0001>

<bundles_post_ra>
// kernel: iou_loss.1
= control target key start
LH: loop header
LB: loop body
LE: loop exit
PB: predicated region body
PF: predicated region fallthrough
CT: control target
= control target key end

     0   :  { %s220_s0 = inlined_call_operand.vmem [shape: f32[8,8,128], index: 0, kind: input, shape index: {}]   ;;  %s221_s1 = inlined_call_operand.vmem [shape: f32[8,128], index: 1, kind: input, shape index: {}]   ;;  %s222_s2 = inlined_call_operand.vmem [shape: f32[1,128], index: 2, kind: output, shape index: {}]  }
   0x1   :  { %v18_v0 = vld [vmem:[%s220_s0] sm:$0xff]  ;;  %v161_v1 = vld [vmem:[%s220_s0 + $0x10] sm:$0xff]  ;;  %v160_v2 = vld [vmem:[%s220_s0 + $0x8] sm:$0xff] }
   0x2   :  { %v162_v3 = vld [vmem:[%s220_s0 + $0x18] sm:$0xff]  ;;  %v163_v4 = vld [vmem:[%s220_s0 + $0x20] sm:$0xff]  ;;  %v40_v5 = vmul.f32 0.5, %v161_v1  ;;  %v164_v6 = vld [vmem:[%s220_s0 + $0x28] sm:$0xff] }
   0x3   :  { %v165_v7 = vld [vmem:[%s220_s0 + $0x30] sm:$0xff]  ;;  %v166_v8 = vld [vmem:[%s220_s0 + $0x38] sm:$0xff]  ;;  %v43_v9 = vmul.f32 0.5, %v162_v3  ;;  %v88_v31 = vld [vmem:[%s221_s1] sm:$0xff] }
   0x4   :  { %v41_v10 = vsub.f32 %v18_v0, %v40_v5  ;;  %v42_v11 = vadd.f32 %v40_v5, %v18_v0  ;;  %v46_v12 = vmul.f32 0.5, %v165_v7  ;;  %v49_v13 = vmul.f32 0.5, %v166_v8  ;;  %137 = vadd.xlane.f32.xlu1 %v88_v31 }
   0x5   :  { %v44_v14 = vsub.f32 %v160_v2, %v43_v9  ;;  %v45_v15 = vadd.f32 %v160_v2, %v43_v9 }
   0x6   :  { %v47_v16 = vsub.f32 %v163_v4, %v46_v12  ;;  %v48_v17 = vadd.f32 %v163_v4, %v46_v12  ;;  %v50_v18 = vsub.f32 %v164_v6, %v49_v13  ;;  %v51_v19 = vadd.f32 %v164_v6, %v49_v13 }
   0x7   :  { %v61_v20 = vsub.f32 %v42_v11, %v41_v10  ;;  %v62_v21 = vsub.f32 %v45_v15, %v44_v14 }
   0x8   :  { %v52_v22 = vmin.f32 %v42_v11, %v48_v17  ;;  %v53_v23 = vmax.f32 %v41_v10, %v47_v16  ;;  %v56_v24 = vmin.f32 %v45_v15, %v51_v19  ;;  %v57_v25 = vmax.f32 %v44_v14, %v50_v18 }
   0x9   :  { %v63_v26 = vadd.f32 1e-07, %v62_v21  ;;  %v64_v27 = vsub.f32 %v48_v17, %v47_v16  ;;  %v65_v28 = vsub.f32 %v51_v19, %v50_v18  ;;  %v107_v11 = vlaneseq }
   0xa   :  { %v54_v29 = vsub.f32 %v52_v22, %v53_v23  ;;  %v58_v30 = vsub.f32 %v56_v24, %v57_v25 }
   0xb   :  { %v66_v32 = vadd.f32 1e-07, %v65_v28  ;;  %v67_v33 = vmul.f32 %v63_v26, %v61_v20  ;;  %v108_v12 = vand.u32 127, %v107_v11 }
   0xc   :  { %v55_v34 = vmax.f32 %v54_v29, 0.0  ;;  %v59_v35 = vmax.f32 %v58_v30, 0.0 }
   0xd   :  { %v68_v36 = vmul.f32 %v66_v32, %v64_v27  ;;  %vm109_vm4 = vcmp.eq.s32.totalorder %v108_v12, 0  ;;  %vm122_vm5 = vcmp.eq.s32.totalorder %v108_v12, 1  ;;  %vm135_vm6 = vcmp.eq.s32.totalorder %v108_v12, 2 }
   0xe   :  { %v60_v37 = vmul.f32 %v59_v35, %v55_v34 }
   0xf   :  { %v69_v38 = vadd.f32 %v68_v36, %v67_v33 }
  0x11   :  { %v70_v39 = vsub.f32 %v69_v38, %v60_v37 }
  0x13   :  { %v71_v40 = vadd.f32 1e-07, %v70_v39 }
  0x15   :  { %173 = vrcp.f32 %v71_v40  ;;  %v83_v43 = vand.u32 2147483648, %v71_v40  ;;  %vm77_vm0 = vweird.f32 %v71_v40  ;;  %v81_v45 = vand.u32 2147483647, %v71_v40 }
  0x17   :  { %v84_v47 = vor.u32 1.1754944e-38, %v83_v43  ;;  %vm82_vm3 = vcmp.eq.f32.partialorder %v81_v45, 8.507059e+37 }
  0x1b   :  { %v174_v41 = vpop.eup %173 }
  0x1c   :  { %v73_v42 = vmul.f32 %v174_v41, %v71_v40  ;;  %vm78_vm1 = vweird.f32 %v174_v41 }
  0x1d   :  { %vm79_vm2 = vmor %vm77_vm0, %vm78_vm1 }
  0x1e   :  { %v74_v44 = vsub.f32 1.0, %v73_v42 }
  0x20   :  { %v75_v46 = vmul.f32 %v174_v41, %v74_v44 }
  0x22   :  { %v76_v48 = vadd.f32 %v174_v41, %v75_v46 }
  0x24   :  { %v80_v49 = vsel %vm79_vm2, %v174_v41, %v76_v48 }
  0x25   :  { %v85_v50 = vsel %vm82_vm3, %v84_v47, %v80_v49 }
  0x26   :  { %v86_v51 = vmul.f32 %v85_v50, %v60_v37 }
  0x28   :  { %v87_v52 = vsub.f32 1.0, %v86_v51 }
  0x2a   :  { %111 = vadd.xlane.f32.xlu0 %v87_v52  ;;  %v90_v53 = vmul.f32 %v88_v31, %v87_v52 }
  0x32   :  { %124 = vadd.xlane.f32.xlu0 %v90_v53 }
  0x77   :  { %v138_v54 = vpop.xlane.xlu1 %137 }
  0x78   :  { %v139_v56 = vrot.slane %v138_v54, 4 }
  0x7a   :  { %v140_v59 = vadd.f32 %v139_v56, %v138_v54 }
  0x7c   :  { %v141_v62 = vrot.slane %v140_v59, 2 }
  0x7e   :  { %v142_v4 = vadd.f32 %v141_v62, %v140_v59 }
  0x80   :  { %v143_v7 = vrot.slane %v142_v4, 1 }
  0x82   :  { %v144_v10 = vadd.f32 %v143_v7, %v142_v4 }
  0x9d   :  { %v112_v55 = vpop.xlane.xlu0 %111 }
  0x9e   :  { %v113_v57 = vrot.slane %v112_v55, 4 }
  0xa0   :  { %v114_v58 = vadd.f32 %v113_v57, %v112_v55 }
  0xa2   :  { %v115_v60 = vrot.slane %v114_v58, 2 }
  0xa4   :  { %v116_v61 = vadd.f32 %v115_v60, %v114_v58 }
  0xa5   :  { %v125_v63 = vpop.xlane.xlu0 %124 }
  0xa6   :  { %v126_v0 = vrot.slane %v125_v63, 4  ;;  %v117_v1 = vrot.slane %v116_v61, 1 }
  0xa8   :  { %v127_v2 = vadd.f32 %v126_v0, %v125_v63  ;;  %v118_v3 = vadd.f32 %v117_v1, %v116_v61 }
  0xaa   :  { %v128_v5 = vrot.slane %v127_v2, 2  ;;  %167 = vpush %v118_v3 }
  0xac   :  { %v129_v6 = vadd.f32 %v128_v5, %v127_v2 }
  0xae   :  { %v130_v8 = vrot.slane %v129_v6, 1 }
  0xb0   :  { %v131_v9 = vadd.f32 %v130_v8, %v129_v6 }
  0xb2   :  { %169 = vpush %v131_v9 }
  0xb3   :  { %171 = vpush %v144_v10 }
  0xdb   :  { %s168_s1 = spop %167 }
  0xdc   :  { %v120_v13 = vstv %s168_s1 }
  0xdd   :  { %v121_v14 = vsel %vm109_vm4, %v120_v13, 0.0 }
  0xe3   :  { %s170_s26 = spop %169 }
  0xe4   :  { %v133_v15 = vstv %s170_s26  ;;  %s172_s27 = spop %171 }
  0xe5   :  { %v134_v16 = vsel %vm122_vm5, %v133_v15, %v121_v14  ;;  %v146_v17 = vstv %s172_s27 }
  0xe6   :  { %v147_v18 = vsel %vm135_vm6, %v146_v17, %v134_v16 }
  0xe7   :  { %148 = vst [vmem:[%s222_s2] sm:$0x1] %v147_v18 }

</bundles_post_ra>
